<compile_context>
chip_gen: v5e
topology: v5e:2x2
jax: 0.10.0
libtpu: 0.0.40
codegen_flags: <defaults>
</compile_context>

<pallas_src>
import jax
import jax.numpy as jnp
from jax import lax
from jax.experimental import pallas as pl
from jax.experimental.pallas import tpu as pltpu


def _pick_tiles(R, row_bytes, step_bytes=4 << 20, sub_bytes=512 << 10):
    """Rows per grid step (tb) and rows per in-kernel sub-chunk (tsub)."""
    # sub-chunk: bounds live vector temporaries; multiple of 8 sublanes when possible
    tsub = max(1, min(R, sub_bytes // max(row_bytes, 1)))
    if 8 <= tsub < R:
        tsub = (tsub // 8) * 8
    # grid block: ~step_bytes of input per grid step, capped at R
    per = max(1, step_bytes // max(row_bytes * tsub, 1))
    tb = min(tsub * per, R)
    if tb < R:
        # block smaller than the array: sublane dim must be a multiple of 8
        tb = min(max(8, (tb // 8) * 8), R)
    tsub = min(tsub, tb)
    return tb, tsub


def softpool3d(x, kernel_size=2, stride=2, padding=0):
    """SoftPool3D forward. x: (N, C, D, H, W), float32 or bfloat16 (NCDHW)."""
    assert padding == 0 and stride == kernel_size, \
        "only the module defaults (stride == kernel_size, padding == 0) are supported"
    k = int(kernel_size)
    N, C, D, H, W = x.shape
    Do, Ho, Wo = D // k, H // k, W // k
    assert Do >= 1 and Ho >= 1 and Wo >= 1, "input smaller than the pooling window"
    Dk, Hk, Wk = Do * k, Ho * k, Wo * k
    if (D, H, W) != (Dk, Hk, Wk):
        # floor behaviour of max_pool3d: drop the ragged tail (one XLA slice copy)
        x = x[:, :, :Dk, :Hk, :Wk]

    R = N * C * Do          # independent pooling slabs
    P = Hk * Wk             # one depth plane flattened onto the lane axis
    L = k * P               # one full pooling slab (k depth planes), flattened
    Q = Ho * Wo             # one output plane, flattened

    xv = x.reshape(R, L)    # free contiguous reshape (no transpose, no pad)

    isz = x.dtype.itemsize
    if x.dtype == jnp.float32:
        sel_dtype, sel_isz = jnp.float32, 4
        prec = lax.Precision.HIGHEST      # exact f32 selection through the MXU
    else:
        sel_dtype, sel_isz = x.dtype, isz
        prec = lax.Precision.DEFAULT      # bf16 x {0,1} -> f32 acc is already exact

    # TODO(synk): chunk the H axis (second grid dim + per-chunk selector) if the
    # 0/1 selector outgrows this VMEM budget (very large H*W planes).
    assert P * Q * sel_isz <= (4 << 20), "spatial plane too large for a single selector"

    # lane positions (inside one depth plane) of the window maxima we keep
    pos = (jnp.arange(Ho)[:, None] * (k * Wk) + jnp.arange(Wo)[None, :] * k).reshape(-1)
    sel = (jnp.arange(P)[:, None] == pos[None, :]).astype(sel_dtype)      # (P, Q)

    tb, tsub = _pick_tiles(R, L * isz)
    n_sub = pl.cdiv(tb, tsub)
    grid = (pl.cdiv(R, tb),)

    def kernel(x_ref, sel_ref, o_ref):
        selv = sel_ref[...]

        def process(s0):
            xb = x_ref[pl.ds(s0, tsub), :]                        # (tsub, L)
            # depth: max over the k contiguous lane segments of length P
            m = xb[:, 0:P]
            for j in range(1, k):
                m = jnp.maximum(m, xb[:, j * P:(j + 1) * P])
            # height: rows of the flattened plane are Wk lanes apart (XLU roll)
            hm = m
            for j in range(1, k):
                hm = jnp.maximum(hm, pltpu.roll(m, shift=P - j * Wk, axis=1))
            # width: adjacent lanes
            wm = hm
            for j in range(1, k):
                wm = jnp.maximum(wm, pltpu.roll(hm, shift=P - j, axis=1))
            # compact the Q valid lanes (h % k == 0, w % k == 0) with one exact
            # 0/1-selector matmul on the otherwise idle MXU
            mx = jnp.dot(wm, selv, preferred_element_type=jnp.float32, precision=prec)
            # softpool: max_x / (exp(max_x) + eps)      [max(exp) == exp(max)]
            o_ref[pl.ds(s0, tsub), :] = (mx / (jnp.exp(mx) + 1e-8)).astype(o_ref.dtype)

        if n_sub <= 4:
            for s in range(n_sub):                                # short static loop
                process(min(s * tsub, tb - tsub))
        else:
            def body(s, carry):                                   # bounded live ranges
                process(jnp.minimum(s * tsub, tb - tsub))
                return carry
            lax.fori_loop(0, n_sub, body, 0)

    vmem_need = (2 * tb * L * isz + 2 * tb * Q * isz + 2 * P * Q * sel_isz
                 + 8 * tsub * P * 4 + (2 << 20))
    cost = pl.CostEstimate(
        flops=int(R * (3 * (k - 1) * P + 2 * P * Q)),
        transcendentals=int(R * Q),
        bytes_accessed=int(R * L * isz + R * Q * isz + P * Q * sel_isz))

    out = pl.pallas_call(
        kernel,
        out_shape=jax.ShapeDtypeStruct((R, Q), x.dtype),
        grid_spec=pltpu.PrefetchScalarGridSpec(
            num_scalar_prefetch=0,
            grid=grid,
            in_specs=[
                pl.BlockSpec((tb, L), lambda i: (i, 0)),
                pl.BlockSpec((P, Q), lambda i: (0, 0)),    # constant selector block
            ],
            out_specs=pl.BlockSpec((tb, Q), lambda i: (i, 0)),
        ),
        compiler_params=pltpu.CompilerParams(
            dimension_semantics=("parallel",),
            vmem_limit_bytes=int(min(max(vmem_need, 16 << 20), 48 << 20))),
        cost_estimate=cost,
    )(xv, sel)

    return out.reshape(N, C, Do, Ho, Wo)


def _ref_softpool3d(x, k=2, s=2):
    """Pure-JAX reference mirroring the PyTorch forward."""
    def mp(a):
        return lax.reduce_window(
            a, -jnp.inf, lax.max,
            window_dimensions=(1, 1, k, k, k),
            window_strides=(1, 1, s, s, s),
            padding='VALID')
    return mp(x) / (mp(jnp.exp(x)) + 1e-8)


if __name__ == "__main__":
    key = jax.random.PRNGKey(0)
    # small NCDHW input consistent with a 3-D pooling module
    x = jax.random.normal(key, (2, 4, 8, 16, 16), dtype=jnp.float32)

    y = softpool3d(x, kernel_size=2, stride=2, padding=0)
    y = jax.block_until_ready(y)

    y_ref = _ref_softpool3d(x)
    assert y.shape == (2, 4, 4, 8, 8), y.shape
    assert jnp.allclose(y, y_ref, rtol=1e-5, atol=1e-5), \
        float(jnp.max(jnp.abs(y - y_ref)))

    print("KERNEL_OK")
</pallas_src>

<mosaic_0001>
module attributes {stable_mosaic.version = 11 : i64} {
  func.func @kernel(%arg0: i32, %arg1: memref<32x512xf32, #tpu.memory_space<vmem>>, %arg2: memref<256x64xf32, #tpu.memory_space<vmem>>, %arg3: memref<32x64xf32, #tpu.memory_space<vmem>>) attributes {dimension_semantics = [#tpu.dimension_semantics<parallel>], iteration_bounds = array<i64: 1>, scalar_prefetch = 0 : i64, scratch_operands = 0 : i64, tpu.core_type = #tpu.core_type<tc>, window_params = [{transform_indices = @transform_0, window_bounds = array<i64: 32, 512>}, {pipeline_mode = #tpu.pipeline_mode<synchronous>, transform_indices = @transform_1, window_bounds = array<i64: 256, 64>}, {transform_indices = @transform_2, window_bounds = array<i64: 32, 64>}]} {
    %c0 = arith.constant 0 : index
    %c0_0 = arith.constant 0 : index
    %0 = vector.load %arg2[%c0, %c0_0] : memref<256x64xf32, #tpu.memory_space<vmem>>, vector<256x64xf32>
    %c0_1 = arith.constant 0 : index
    %c0_2 = arith.constant 0 : index
    %1 = vector.load %arg1[%c0_1, %c0_2] : memref<32x512xf32, #tpu.memory_space<vmem>>, vector<32x512xf32>
    %2 = vector.extract_strided_slice %1 {offsets = [0, 0], sizes = [32, 256], strides = [1, 1]} : vector<32x512xf32> to vector<32x256xf32>
    %3 = vector.extract_strided_slice %1 {offsets = [0, 256], sizes = [32, 256], strides = [1, 1]} : vector<32x512xf32> to vector<32x256xf32>
    %4 = arith.maximumf %2, %3 : vector<32x256xf32>
    %c240_i32 = arith.constant 240 : i32
    %5 = tpu.dynamic_rotate %4 by %c240_i32 dim 1 : vector<32x256xf32>, i32 -> vector<32x256xf32>
    %6 = arith.maximumf %4, %5 : vector<32x256xf32>
    %c255_i32 = arith.constant 255 : i32
    %7 = tpu.dynamic_rotate %6 by %c255_i32 dim 1 : vector<32x256xf32>, i32 -> vector<32x256xf32>
    %8 = arith.maximumf %6, %7 : vector<32x256xf32>
    %cst = arith.constant dense<0.000000e+00> : vector<32x64xf32>
    %9 = tpu.matmul %8, %0, %cst {dimension_numbers = #tpu.dot_dimension_numbers<[1], [0], [0], [1], [0, 0, 1, 1], [], []>, precision = #tpu.contract_precision<fp32>} : vector<32x256xf32>, vector<256x64xf32>, vector<32x64xf32> -> vector<32x64xf32>
    %10 = math.exp %9 : vector<32x64xf32>
    %cst_3 = arith.constant 9.99999993E-9 : f32
    %11 = vector.broadcast %cst_3 : f32 to vector<32x64xf32>
    %12 = arith.addf %10, %11 : vector<32x64xf32>
    %13 = arith.divf %9, %12 : vector<32x64xf32>
    %c0_4 = arith.constant 0 : index
    %c0_5 = arith.constant 0 : index
    %14 = vector.load %arg3[%c0_4, %c0_5] : memref<32x64xf32, #tpu.memory_space<vmem>>, vector<32x64xf32>
    tpu.vector_store %arg3[%c0_4, %c0_5], %13 {strides = array<i32>} : memref<32x64xf32, #tpu.memory_space<vmem>>, vector<32x64xf32>,
    return
  }
  func.func @transform_0(%arg0: i32) -> (i32, i32) {
    %c0_i32 = arith.constant 0 : i32
    %c0_i32_0 = arith.constant 0 : i32
    return %arg0, %c0_i32 : i32, i32
  }
  func.func @transform_1(%arg0: i32) -> (i32, i32) {
    %c0_i32 = arith.constant 0 : i32
    %c0_i32_0 = arith.constant 0 : i32
    %c0_i32_1 = arith.constant 0 : i32
    return %c0_i32, %c0_i32_0 : i32, i32
  }
  func.func @transform_2(%arg0: i32) -> (i32, i32) {
    %c0_i32 = arith.constant 0 : i32
    %c0_i32_0 = arith.constant 0 : i32
    return %arg0, %c0_i32 : i32, i32
  }
}

</mosaic_0001>

<bundles_post_ra>
// kernel: tpu_custom_call.1
= control target key start
LH: loop header
LB: loop body
LE: loop exit
PB: predicated region body
PF: predicated region fallthrough
CT: control target
= control target key end

     0   :  { %s1146_s17 = smov 112   ;;  %s1965_s0 = inlined_call_operand.vmem [shape: f32[32,512], index: 0, kind: input, shape index: {}]   ;;  %s1966_s1 = inlined_call_operand.vmem [shape: f32[256,64], index: 1, kind: input, shape index: {}]   ;;  %s1967_s2 = inlined_call_operand.hbm [shape: f32[32,64], index: 2, kind: output, shape index: {}]  }
   0x1   :  { %v48_v0 = vld [vmem:[%s1965_s0 + $0x20] sm:$0xff]  ;;  %v50_v1 = vld [vmem:[%s1965_s0 + $0x30] sm:$0xff]  ;;  %v49_v6 = vld [vmem:[%s1965_s0 + $0x28] sm:$0xff] }
   0x2   :  { %v44_v2 = vld [vmem:[%s1965_s0] sm:$0xff]  ;;  %v62_v3 = vmax.f32 %v48_v0, %v50_v1  ;;  %v46_v4 = vld [vmem:[%s1965_s0 + $0x10] sm:$0xff]  ;;  %v51_v7 = vld [vmem:[%s1965_s0 + $0x38] sm:$0xff] }
   0x3   :  { %v60_v5 = vmax.f32 %v44_v2, %v46_v4  ;;  %v52_v8 = vld [vmem:[%s1965_s0 + $0x40] sm:$0xff]  ;;  %v54_v9 = vld [vmem:[%s1965_s0 + $0x50] sm:$0xff]  ;;  %v45_v10 = vld [vmem:[%s1965_s0 + $0x8] sm:$0xff] }
   0x4   :  { %70 = vrot.lane.b32.xlu1 %v62_v3, %s1146_s17  ;;  %v47_v11 = vld [vmem:[%s1965_s0 + $0x18] sm:$0xff]  ;;  %v64_v12 = vmax.f32 %v52_v8, %v54_v9 }
   0x5   :  { %68 = vrot.lane.b32.xlu0 %v60_v5, %s1146_s17 }
   0x6   :  { %7 = vsyncpa [#allocation3], 0  ;;  %v63_v13 = vmax.f32 %v49_v6, %v51_v7  ;;  %72 = vrot.lane.b32.xlu2 %v64_v12, %s1146_s17  ;;  %v61_v14 = vmax.f32 %v45_v10, %v47_v11  ;;  %v53_v15 = vld [vmem:[%s1965_s0 + $0x48] sm:$0xff]  ;;  %v55_v16 = vld [vmem:[%s1965_s0 + $0x58] sm:$0xff]  ;;  %v84_v25 = vlaneseq  ;;  %vm1076_vm6 = vcmask 523264   ;;  %s1087_s23 = sshll.u32 %s1967_s2, 4  ;;  %s1088_s23 = int_to_ptr.hbm [resolvable:$true] %s1087_s23 }
   0x7   :  { %v65_v17 = vmax.f32 %v53_v15, %v55_v16  ;;  %v57_v18 = vld [vmem:[%s1965_s0 + $0x68] sm:$0xff]  ;;  %v59_v19 = vld [vmem:[%s1965_s0 + $0x78] sm:$0xff]  ;;  %v56_v20 = vld [vmem:[%s1965_s0 + $0x60] sm:$0xff]  ;;  %s1149_s24 = smov 128   ;;  %s1150_s25 = smov 8  }
   0x8   :  { %v58_v21 = vld [vmem:[%s1965_s0 + $0x70] sm:$0xff]  ;;  %v67_v22 = vmax.f32 %v57_v18, %v59_v19  ;;  %v27_v24 = vld [vmem:[%s1966_s1 + $0x78] sm:$0xff]  ;;  %v1224_v31 = vand.u32 127, %v84_v25  ;;  %s1147_s0 = smov 127   ;;  %v25_v58 = vld [vmem:[%s1966_s1 + $0x68] sm:$0xff] }
   0x9   :  { %v66_v23 = vmax.f32 %v56_v20, %v58_v21  ;;  %v1217_v26 = vand.u32 4294901760, %v27_v24  ;;  %v26_v56 = vld [vmem:[%s1966_s1 + $0x70] sm:$0xff]  ;;  %v1283_v60 = vand.u32 4294901760, %v25_v58  ;;  %v24_v61 = vld [vmem:[%s1966_s1 + $0x60] sm:$0xff]  ;;  %v23_v1 = vld [vmem:[%s1966_s1 + $0x58] sm:$0xff] }
   0xa   :  { %vm86_vm0 = vcmp.lt.s32.totalorder %v1224_v31, 112  ;;  %v1275_v57 = vand.u32 4294901760, %v26_v56  ;;  %v1295_v0 = vand.u32 4294901760, %v24_v61  ;;  %v22_v6 = vld [vmem:[%s1966_s1 + $0x50] sm:$0xff]  ;;  %v20_v18 = vld [vmem:[%s1966_s1 + $0x40] sm:$0xff]  ;;  %vm119_vm1 = vcmp.lt.s32.totalorder %v1224_v31, 127 }
   0xb   :  { %v1220_v29 = vsub.f32 %v27_v24, %v1217_v26  ;;  %384 = vmatpush.msra.mxu3 %v1217_v26  ;;  %137 = vmatpush.msra.mxu0 %v1217_v26  ;;  %v1292_v63 = vsub.f32 %v25_v58, %v1283_v60  ;;  %v1326_v11 = vand.u32 4294901760, %v22_v6  ;;  %v19_v24 = vld [vmem:[%s1966_s1 + $0x38] sm:$0xff] }
   0xc   :  { %78 = vrot.lane.b32.xlu1 %v63_v13, %s1146_s17  ;;  %v1281_v59 = vsub.f32 %v26_v56, %v1275_v57  ;;  %v1307_v4 = vsub.f32 %v24_v61, %v1295_v0 }
   0xd   :  { %76 = vrot.lane.b32.xlu0 %v61_v14, %s1146_s17  ;;  %v203_v32 = vand.u32 4294901760, %v1220_v29  ;;  %316 = vmatpush.msra.mxu2 %v1220_v29 }
   0xe   :  { %80 = vrot.lane.b32.xlu2 %v65_v17, %s1146_s17  ;;  %386 = vmatpush.msra.mxu3 %v1275_v57  ;;  %v209_v62 = vand.u32 4294901760, %v1281_v59  ;;  %v221_v9 = vand.u32 4294901760, %v1307_v4 }
   0xf   :  { %v204_v33 = vsub.f32 %v1220_v29, %v203_v32  ;;  %139 = vmatpush.msra.mxu0 %v1275_v57  ;;  %319 = vmatpush.msra.mxu2 %v1281_v59  ;;  %v41_v29 = vld [vmem:[%s1966_s1 + $0xe8] sm:$0xff] }
  0x10   :  { %388 = vmatpush.msra.mxu3 %v1283_v60  ;;  %v210_v2 = vsub.f32 %v1281_v59, %v209_v62  ;;  %v40_v59 = vld [vmem:[%s1966_s1 + $0xe0] sm:$0xff] }
  0x11   :  { %v205_v34 = vand.u32 4294901760, %v204_v33  ;;  %141 = vmatpush.msra.mxu0 %v1283_v60  ;;  %322 = vmatpush.msra.mxu2 %v1292_v63 }
  0x12   :  { %390 = vmatpush.msra.mxu3 %v1295_v0  ;;  %v211_v7 = vand.u32 4294901760, %v210_v2 }
  0x13   :  { %206 = vmatpush.msra.mxu1 %v205_v34  ;;  %143 = vmatpush.msra.mxu0 %v1295_v0  ;;  %v18_v34 = vld [vmem:[%s1966_s1 + $0x30] sm:$0xff] }
  0x14   :  { %82 = vrot.lane.b32.xlu1 %v67_v22, %s1146_s17  ;;  %325 = vmatpush.msra.mxu2 %v1307_v4 }
  0x15   :  { %74 = vrot.lane.b32.xlu0 %v66_v23, %s1146_s17  ;;  %212 = vmatpush.msra.mxu1 %v211_v7 }
  0x60   :  { %v73_v28 = vpop.permute.xlu2 %72 }
  0x68   :  { %v81_v41 = vpop.permute.xlu2 %80 }
  0x69   :  { %v93_v44 = vsel %vm86_vm0, %v81_v41, %v73_v28  ;;  %v89_v45 = vsel %vm86_vm0, %v73_v28, %v81_v41  ;;  %v17_v41 = vld [vmem:[%s1966_s1 + $0x28] sm:$0xff] }
  0x6a   :  { %v1253_v47 = vmax.f32 %v65_v17, %v93_v44  ;;  %v1255_v48 = vmax.f32 %v64_v12, %v89_v45  ;;  %v21_v12 = vld [vmem:[%s1966_s1 + $0x48] sm:$0xff]  ;;  %v1340_v17 = vsub.f32 %v22_v6, %v1326_v11  ;;  %v16_v44 = vld [vmem:[%s1966_s1 + $0x20] sm:$0xff]  ;;  %v15_v45 = vld [vmem:[%s1966_s1 + $0x18] sm:$0xff] }
  0x6b   :  { %v1337_v16 = vand.u32 4294901760, %v21_v12  ;;  %v1408_v56 = vand.u32 4294901760, %v16_v44  ;;  %v1410_v58 = vand.u32 4294901760, %v15_v45 }
  0x6d   :  { %v1351_v21 = vsub.f32 %v21_v12, %v1337_v16  ;;  %v1423_v7 = vsub.f32 %v16_v44, %v1408_v56 }
  0x76   :  { %v71_v27 = vpop.permute.xlu1 %70 }
  0x77   :  { %v69_v30 = vpop.permute.xlu0 %68 }
  0x7e   :  { %v79_v35 = vpop.permute.xlu1 %78 }
  0x7f   :  { %v88_v36 = vsel %vm86_vm0, %v71_v27, %v79_v35  ;;  %v77_v37 = vpop.permute.xlu0 %76  ;;  %v92_v46 = vsel %vm86_vm0, %v79_v35, %v71_v27  ;;  %v239_v27 = vand.u32 4294901760, %v1351_v21 }
  0x80   :  { %v1234_v38 = vmax.f32 %v62_v3, %v88_v36  ;;  %v87_v39 = vsel %vm86_vm0, %v69_v30, %v77_v37  ;;  %v91_v40 = vsel %vm86_vm0, %v77_v37, %v69_v30  ;;  %v1257_v49 = vmax.f32 %v63_v13, %v92_v46 }
  0x81   :  { %v1240_v42 = vmax.f32 %v60_v5, %v87_v39  ;;  %v1242_v43 = vmax.f32 %v61_v14, %v91_v40  ;;  %v215_v3 = vand.u32 4294901760, %v1292_v63  ;;  %v1310_v5 = vand.u32 4294901760, %v23_v1 }
  0x82   :  { %105 = vrot.lane.b32.xlu1 %v1234_v38, %s1147_s0  ;;  %v222_v14 = vsub.f32 %v1307_v4, %v221_v9  ;;  %v1365_v30 = vand.u32 4294901760, %v19_v24  ;;  %v240_v35 = vsub.f32 %v1351_v21, %v239_v27  ;;  %v1383_v39 = vand.u32 4294901760, %v18_v34  ;;  %v38_v4 = vld [vmem:[%s1966_s1 + $0xd0] sm:$0xff] }
  0x83   :  { %111 = vrot.lane.b32.xlu0 %v1242_v43, %s1147_s0  ;;  %103 = vrot.lane.b32.xlu2 %v1240_v42, %s1147_s0  ;;  %v216_v8 = vsub.f32 %v1292_v63, %v215_v3  ;;  %v1322_v10 = vsub.f32 %v23_v1, %v1310_v5 }
  0x84   :  { %392 = vmatpush.msra.mxu3 %v1310_v5  ;;  %145 = vmatpush.msra.mxu0 %v1310_v5  ;;  %v223_v19 = vand.u32 4294901760, %v222_v14  ;;  %v1381_v37 = vsub.f32 %v19_v24, %v1365_v30  ;;  %v241_v46 = vand.u32 4294901760, %v240_v35 }
  0x85   :  { %v217_v13 = vand.u32 4294901760, %v216_v8  ;;  %v227_v15 = vand.u32 4294901760, %v1322_v10  ;;  %328 = vmatpush.msra.mxu2 %v1322_v10  ;;  %v1426_v8 = vsub.f32 %v15_v45, %v1410_v58 }
  0x86   :  { %v83_v50 = vpop.permute.xlu1 %82  ;;  %394 = vmatpush.msra.mxu3 %v1326_v11  ;;  %147 = vmatpush.msra.mxu0 %v1326_v11 }
  0x87   :  { %v75_v51 = vpop.permute.xlu0 %74  ;;  %218 = vmatpush.msra.mxu1 %v217_v13  ;;  %v228_v20 = vsub.f32 %v1322_v10, %v227_v15  ;;  %331 = vmatpush.msra.mxu2 %v1340_v17  ;;  %v37_v10 = vld [vmem:[%s1966_s1 + $0xc8] sm:$0xff] }
  0x88   :  { %v90_v52 = vsel %vm86_vm0, %v75_v51, %v83_v50  ;;  %v94_v53 = vsel %vm86_vm0, %v83_v50, %v75_v51  ;;  %396 = vmatpush.msra.mxu3 %v1337_v16  ;;  %149 = vmatpush.msra.mxu0 %v1337_v16  ;;  %v251_v51 = vand.u32 4294901760, %v1381_v37 }
  0x89   :  { %v1266_v54 = vmax.f32 %v66_v23, %v90_v52  ;;  %v1268_v55 = vmax.f32 %v67_v22, %v94_v53  ;;  %v1353_v22 = vand.u32 4294901760, %v20_v18  ;;  %v233_v23 = vand.u32 4294901760, %v1340_v17  ;;  %224 = vmatpush.msra.mxu1 %v223_v19  ;;  %334 = vmatpush.msra.mxu2 %v1351_v21  ;;  %v35_v21 = vld [vmem:[%s1966_s1 + $0xb8] sm:$0xff] }
  0x8a   :  { %115 = vrot.lane.b32.xlu1 %v1253_v47, %s1147_s0  ;;  %v229_v25 = vand.u32 4294901760, %v228_v20  ;;  %v1402_v52 = vsub.f32 %v18_v34, %v1383_v39  ;;  %v1406_v53 = vand.u32 4294901760, %v17_v41  ;;  %v252_v1 = vsub.f32 %v1381_v37, %v251_v51  ;;  %v14_v20 = vld [vmem:[%s1966_s1 + $0x10] sm:$0xff] }
  0x8b   :  { %107 = vrot.lane.b32.xlu0 %v1255_v48, %s1147_s0  ;;  %113 = vrot.lane.b32.xlu2 %v1257_v49, %s1147_s0  ;;  %v1363_v28 = vsub.f32 %v20_v18, %v1353_v22  ;;  %v234_v33 = vsub.f32 %v1340_v17, %v233_v23  ;;  %v269_v18 = vand.u32 4294901760, %v1423_v7  ;;  %v275_v19 = vand.u32 4294901760, %v1426_v8  ;;  %v36_v17 = vld [vmem:[%s1966_s1 + $0xc0] sm:$0xff] }
  0x8c   :  { %398 = vmatpush.msra.mxu3 %v1353_v22  ;;  %230 = vmatpush.msra.mxu1 %v229_v25  ;;  %v257_v2 = vand.u32 4294901760, %v1402_v52  ;;  %v1419_v6 = vsub.f32 %v17_v41, %v1406_v53  ;;  %v253_v12 = vand.u32 4294901760, %v252_v1  ;;  %v1440_v25 = vand.u32 4294901760, %v14_v20 }
  0x8d   :  { %v245_v36 = vand.u32 4294901760, %v1363_v28  ;;  %151 = vmatpush.msra.mxu0 %v1353_v22  ;;  %v235_v40 = vand.u32 4294901760, %v234_v33  ;;  %337 = vmatpush.msra.mxu2 %v1363_v28  ;;  %v270_v34 = vsub.f32 %v1423_v7, %v269_v18  ;;  %v276_v35 = vsub.f32 %v1426_v8, %v275_v19 }
  0x8e   :  { %400 = vmatpush.msra.mxu3 %v1365_v30  ;;  %v258_v13 = vsub.f32 %v1402_v52, %v257_v2  ;;  %v263_v14 = vand.u32 4294901760, %v1419_v6  ;;  %v1458_v41 = vsub.f32 %v14_v20, %v1440_v25 }
  0x8f   :  { %v246_v50 = vsub.f32 %v1363_v28, %v245_v36  ;;  %153 = vmatpush.msra.mxu0 %v1365_v30  ;;  %236 = vmatpush.msra.mxu1 %v235_v40  ;;  %v13_v40 = vld [vmem:[%s1966_s1 + $0x8] sm:$0xff]  ;;  %v34_v28 = vld [vmem:[%s1966_s1 + $0xb0] sm:$0xff] }
  0x90   :  { %340 = vmatpush.msra.mxu2 %v1381_v37  ;;  %402 = vmatpush.msra.mxu3 %v1383_v39  ;;  %v259_v24 = vand.u32 4294901760, %v258_v13  ;;  %v264_v33 = vsub.f32 %v1419_v6, %v263_v14  ;;  %v1460_v44 = vand.u32 4294901760, %v13_v40  ;;  %v277_v13 = vand.u32 4294901760, %v276_v35 }
  0x91   :  { %v247_v61 = vand.u32 4294901760, %v246_v50  ;;  %155 = vmatpush.msra.mxu0 %v1383_v39  ;;  %242 = vmatpush.msra.mxu1 %v241_v46  ;;  %v271_v46 = vand.u32 4294901760, %v270_v34  ;;  %v12_v50 = vld [vmem:[%s1966_s1] sm:$0xff] }
  0x92   :  { %343 = vmatpush.msra.mxu2 %v1402_v52  ;;  %404 = vmatpush.msra.mxu3 %v1406_v53  ;;  %v265_v45 = vand.u32 4294901760, %v264_v33  ;;  %v1470_v1 = vsub.f32 %v13_v40, %v1460_v44 }
  0x93   :  { %117 = vrot.lane.b32.xlu0 %v1268_v55, %s1147_s0  ;;  %109 = vrot.lane.b32.xlu2 %v1266_v54, %s1147_s0 }
  0x94   :  { %157 = vmatpush.msra.mxu0 %v1406_v53  ;;  %248 = vmatpush.msra.mxu1 %v247_v61  ;;  %v1969_v61 = vand.u32 4294901760, %v1458_v41 }
  0x95   :  { %346 = vmatpush.msra.mxu2 %v1419_v6  ;;  %406 = vmatpush.msra.mxu3 %v1408_v56 }
  0x96   :  { %159 = vmatpush.msra.mxu0 %v1408_v56  ;;  %254 = vmatpush.msra.mxu1 %v253_v12  ;;  %v1472_v12 = vand.u32 4294901760, %v12_v50  ;;  %v282_v20 = vsub.f32 %v1458_v41, %v1969_v61 }
  0x97   :  { %349 = vmatpush.msra.mxu2 %v1423_v7  ;;  %408 = vmatpush.msra.mxu3 %v1410_v58 }
  0x98   :  { %161 = vmatpush.msra.mxu0 %v1410_v58  ;;  %260 = vmatpush.msra.mxu1 %v259_v24  ;;  %v1968_v24 = vand.u32 4294901760, %v1470_v1  ;;  %v1482_v33 = vsub.f32 %v12_v50, %v1472_v12  ;;  %v283_v34 = vand.u32 4294901760, %v282_v20 }
  0x99   :  { %352 = vmatpush.msra.mxu2 %v1426_v8  ;;  %410 = vmatpush.msra.mxu3 %v1440_v25 }
  0x9a   :  { %163 = vmatpush.msra.mxu0 %v1440_v25  ;;  %266 = vmatpush.msra.mxu1 %v265_v45  ;;  %v288_v35 = vsub.f32 %v1470_v1, %v1968_v24  ;;  %v293_v40 = vand.u32 4294901760, %v1482_v33  ;;  %v43_v45 = vld [vmem:[%s1966_s1 + $0xf8] sm:$0xff] }
  0x9b   :  { %355 = vmatpush.msra.mxu2 %v1458_v41  ;;  %412 = vmatpush.msra.mxu3 %v1460_v44  ;;  %v1500_v20 = vand.u32 4294901760, %v43_v45 }
  0x9c   :  { %165 = vmatpush.msra.mxu0 %v1460_v44  ;;  %272 = vmatpush.msra.mxu1 %v271_v46  ;;  %v289_v46 = vand.u32 4294901760, %v288_v35  ;;  %v294_v50 = vsub.f32 %v1482_v33, %v293_v40 }
  0x9d   :  { %358 = vmatpush.msra.mxu2 %v1470_v1  ;;  %414 = vmatpush.msra.mxu3 %v1472_v12  ;;  %v1511_v35 = vsub.f32 %v43_v45, %v1500_v20 }
  0x9e   :  { %167 = vmatpush.msra.mxu0 %v1472_v12  ;;  %278 = vmatpush.msra.mxu1 %v277_v13  ;;  %v42_v13 = vld [vmem:[%s1966_s1 + $0xf0] sm:$0xff]  ;;  %v295_v24 = vand.u32 4294901760, %v294_v50 }
  0x9f   :  { %361 = vmatpush.msra.mxu2 %v1482_v33  ;;  %v1508_v61 = vand.u32 4294901760, %v42_v13 }
  0xa0   :  { %443 = vmatpush.msrb.mxu0 %v203_v32  ;;  %284 = vmatpush.msra.mxu1 %v283_v34  ;;  %v1970_v32 = vand.u32 4294901760, %v1511_v35  ;;  %v1520_v34 = vand.u32 4294901760, %v41_v29 }
  0xa1   :  { %571 = vmatpush.msrb.mxu2 %v1500_v20  ;;  %v1523_v50 = vsub.f32 %v42_v13, %v1508_v61 }
  0xa2   :  { %447 = vmatpush.msrb.mxu0 %v209_v62  ;;  %290 = vmatpush.msra.mxu1 %v289_v46  ;;  %v638_v62 = vsub.f32 %v1511_v35, %v1970_v32  ;;  %v1536_v46 = vand.u32 4294901760, %v40_v59  ;;  %v1539_v63 = vsub.f32 %v41_v29, %v1520_v34 }
  0xa3   :  { %573 = vmatpush.msrb.mxu2 %v1508_v61  ;;  %v1971_v45 = vand.u32 4294901760, %v1523_v50 }
  0xa4   :  { %451 = vmatpush.msrb.mxu0 %v215_v3  ;;  %296 = vmatpush.msra.mxu1 %v295_v24  ;;  %v39_v3 = vld [vmem:[%s1966_s1 + $0xd8] sm:$0xff]  ;;  %v649_v13 = vand.u32 4294901760, %v1539_v63  ;;  %v1555_v32 = vsub.f32 %v40_v59, %v1536_v46 }
  0xa5   :  { %575 = vmatpush.msrb.mxu2 %v1520_v34  ;;  %v644_v24 = vsub.f32 %v1523_v50, %v1971_v45  ;;  %v1552_v29 = vand.u32 4294901760, %v39_v3 }
  0xa6   :  { %522 = vmatpush.msrb.mxu1 %v1217_v26  ;;  %455 = vmatpush.msrb.mxu0 %v221_v9  ;;  %v639_v26 = vand.u32 4294901760, %v638_v62  ;;  %v650_v9 = vsub.f32 %v1539_v63, %v649_v13  ;;  %v1566_v62 = vand.u32 4294901760, %v38_v4  ;;  %v655_v45 = vand.u32 4294901760, %v1555_v32 }
  0xa7   :  { %577 = vmatpush.msrb.mxu2 %v1536_v46  ;;  %v1569_v59 = vsub.f32 %v39_v3, %v1552_v29 }
  0xa8   :  { %524 = vmatpush.msrb.mxu1 %v1275_v57  ;;  %459 = vmatpush.msrb.mxu0 %v227_v15  ;;  %v645_v57 = vand.u32 4294901760, %v644_v24  ;;  %v1583_v3 = vsub.f32 %v38_v4, %v1566_v62  ;;  %v656_v24 = vsub.f32 %v1555_v32, %v655_v45  ;;  %v1599_v4 = vand.u32 4294901760, %v36_v17 }
  0xa9   :  { %640 = vmatpush.msrb.mxu3 %v639_v26  ;;  %579 = vmatpush.msrb.mxu2 %v1552_v29  ;;  %v661_v15 = vand.u32 4294901760, %v1569_v59  ;;  %v1580_v26 = vand.u32 4294901760, %v37_v10 }
  0xaa   :  { %526 = vmatpush.msrb.mxu1 %v1283_v60  ;;  %463 = vmatpush.msrb.mxu0 %v233_v23  ;;  %v651_v60 = vand.u32 4294901760, %v650_v9  ;;  %v1973_v23 = vand.u32 4294901760, %v1583_v3  ;;  %v657_v9 = vand.u32 4294901760, %v656_v24  ;;  %v1619_v24 = vsub.f32 %v36_v17, %v1599_v4 }
  0xab   :  { %646 = vmatpush.msrb.mxu3 %v645_v57  ;;  %581 = vmatpush.msrb.mxu2 %v1566_v62  ;;  %v1602_v57 = vsub.f32 %v37_v10, %v1580_v26 }
  0xac   :  { %528 = vmatpush.msrb.mxu1 %v1295_v0  ;;  %467 = vmatpush.msrb.mxu0 %v239_v27  ;;  %v662_v0 = vsub.f32 %v1569_v59, %v661_v15  ;;  %v668_v27 = vsub.f32 %v1583_v3, %v1973_v23  ;;  %v1975_v17 = vand.u32 4294901760, %v1619_v24 }
  0xad   :  { %652 = vmatpush.msrb.mxu3 %v651_v60  ;;  %583 = vmatpush.msrb.mxu2 %v1580_v26  ;;  %v1972_v10 = vand.u32 4294901760, %v1602_v57  ;;  %v1615_v60 = vand.u32 4294901760, %v35_v21 }
  0xae   :  { %530 = vmatpush.msrb.mxu1 %v1310_v5  ;;  %471 = vmatpush.msrb.mxu0 %v245_v36  ;;  %v663_v5 = vand.u32 4294901760, %v662_v0  ;;  %v1628_v0 = vand.u32 4294901760, %v34_v28 }
  0xaf   :  { %658 = vmatpush.msrb.mxu3 %v657_v9  ;;  %585 = vmatpush.msrb.mxu2 %v1599_v4  ;;  %v674_v36 = vsub.f32 %v1602_v57, %v1972_v10  ;;  %v1631_v9 = vsub.f32 %v35_v21, %v1615_v60 }
  0xb0   :  { %532 = vmatpush.msrb.mxu1 %v1326_v11  ;;  %v669_v11 = vand.u32 4294901760, %v668_v27  ;;  %475 = vmatpush.msrb.mxu0 %v251_v51  ;;  %v1647_v37 = vsub.f32 %v34_v28, %v1628_v0  ;;  %v680_v51 = vsub.f32 %v1619_v24, %v1975_v17 }
  0xb1   :  { %664 = vmatpush.msrb.mxu3 %v663_v5  ;;  %587 = vmatpush.msrb.mxu2 %v1615_v60  ;;  %v675_v10 = vand.u32 4294901760, %v674_v36  ;;  %v1974_v21 = vand.u32 4294901760, %v1631_v9 }
  0xb2   :  { %534 = vmatpush.msrb.mxu1 %v1337_v16  ;;  %v33_v16 = vld [vmem:[%s1966_s1 + $0xa8] sm:$0xff]  ;;  %479 = vmatpush.msrb.mxu0 %v257_v2  ;;  %v1979_v52 = vand.u32 4294901760, %v1647_v37 }
  0xb3   :  { %v1644_v23 = vand.u32 4294901760, %v33_v16  ;;  %670 = vmatpush.msrb.mxu3 %v669_v11  ;;  %589 = vmatpush.msrb.mxu2 %v1628_v0  ;;  %v686_v5 = vsub.f32 %v1631_v9, %v1974_v21  ;;  %v681_v11 = vand.u32 4294901760, %v680_v51 }
  0xb4   :  { %536 = vmatpush.msrb.mxu1 %v1353_v22  ;;  %v32_v22 = vld [vmem:[%s1966_s1 + $0xa0] sm:$0xff]  ;;  %483 = vmatpush.msrb.mxu0 %v263_v14  ;;  %v692_v21 = vsub.f32 %v1647_v37, %v1979_v52 }
  0xb5   :  { %v1663_v2 = vand.u32 4294901760, %v32_v22  ;;  %v1666_v28 = vsub.f32 %v33_v16, %v1644_v23  ;;  %676 = vmatpush.msrb.mxu3 %v675_v10  ;;  %591 = vmatpush.msrb.mxu2 %v1644_v23  ;;  %v687_v36 = vand.u32 4294901760, %v686_v5 }
  0xb6   :  { %538 = vmatpush.msrb.mxu1 %v1365_v30  ;;  %v31_v30 = vld [vmem:[%s1966_s1 + $0x98] sm:$0xff]  ;;  %487 = vmatpush.msrb.mxu0 %v269_v18  ;;  %v693_v14 = vand.u32 4294901760, %v692_v21  ;;  %v29_v18 = vld [vmem:[%s1966_s1 + $0x88] sm:$0xff] }
  0xb7   :  { %v1977_v16 = vand.u32 4294901760, %v1666_v28  ;;  %v1679_v17 = vand.u32 4294901760, %v31_v30  ;;  %682 = vmatpush.msrb.mxu3 %v681_v11  ;;  %593 = vmatpush.msrb.mxu2 %v1663_v2  ;;  %v1685_v6 = vsub.f32 %v32_v22, %v1663_v2  ;;  %v1709_v5 = vand.u32 4294901760, %v29_v18 }
  0xb8   :  { %540 = vmatpush.msrb.mxu1 %v1383_v39  ;;  %v30_v39 = vld [vmem:[%s1966_s1 + $0x90] sm:$0xff]  ;;  %491 = vmatpush.msrb.mxu0 %v275_v19  ;;  %v1982_v19 = vand.u32 4294901760, %v1458_v41 }
  0xb9   :  { %v698_v10 = vsub.f32 %v1666_v28, %v1977_v16  ;;  %v1694_v51 = vand.u32 4294901760, %v30_v39  ;;  %v1697_v7 = vsub.f32 %v31_v30, %v1679_v17  ;;  %688 = vmatpush.msrb.mxu3 %v687_v36  ;;  %595 = vmatpush.msrb.mxu2 %v1679_v17 }
  0xba   :  { %542 = vmatpush.msrb.mxu1 %v1406_v53  ;;  %v1976_v53 = vand.u32 4294901760, %v1685_v6  ;;  %495 = vmatpush.msrb.mxu0 %v1982_v19  ;;  %v1983_v19 = vand.u32 4294901760, %v1470_v1 }
  0xbb   :  { %v699_v21 = vand.u32 4294901760, %v698_v10  ;;  %v1978_v22 = vand.u32 4294901760, %v1697_v7  ;;  %v1712_v8 = vsub.f32 %v30_v39, %v1694_v51  ;;  %694 = vmatpush.msrb.mxu3 %v693_v14  ;;  %597 = vmatpush.msrb.mxu2 %v1694_v51  ;;  %v1735_v10 = vsub.f32 %v29_v18, %v1709_v5 }
  0xbc   :  { %544 = vmatpush.msrb.mxu1 %v1408_v56  ;;  %v704_v11 = vsub.f32 %v1685_v6, %v1976_v53  ;;  %v28_v56 = vld [vmem:[%s1966_s1 + $0x80] sm:$0xff]  ;;  %499 = vmatpush.msrb.mxu0 %v1983_v19  ;;  %s1148_s1 = smov [#allocation2]  }
  0xbd   :  { %v710_v41 = vsub.f32 %v1697_v7, %v1978_v22  ;;  %v715_v39 = vand.u32 4294901760, %v1712_v8  ;;  %v1732_v14 = vand.u32 4294901760, %v28_v56  ;;  %700 = vmatpush.msrb.mxu3 %v699_v21  ;;  %599 = vmatpush.msrb.mxu2 %v1709_v5  ;;  %s1085_s20 = sshll.u32 %s1148_s1, 4  ;;  %s1086_s20 = int_to_ptr.vmem [resolvable:$true] %s1085_s20 }
  0xbe   :  { %546 = vmatpush.msrb.mxu1 %v1410_v58  ;;  %v705_v16 = vand.u32 4294901760, %v704_v11  ;;  %503 = vmatpush.msrb.mxu0 %v293_v40 }
  0xbf   :  { %v711_v19 = vand.u32 4294901760, %v710_v41  ;;  %v716_v52 = vsub.f32 %v1712_v8, %v715_v39  ;;  %601 = vmatpush.msrb.mxu2 %v1732_v14 }
  0xc0   :  { %548 = vmatpush.msrb.mxu1 %v1440_v25  ;;  %706 = vmatpush.msrb.mxu3 %v705_v16 }
  0xc1   :  { %v717_v16 = vand.u32 4294901760, %v716_v52 }
  0xc2   :  { %550 = vmatpush.msrb.mxu1 %v1460_v44  ;;  %712 = vmatpush.msrb.mxu3 %v711_v19 }
  0xc4   :  { %552 = vmatpush.msrb.mxu1 %v1472_v12  ;;  %718 = vmatpush.msrb.mxu3 %v717_v16 }
  0xdd   :  { %v1640_v27 = vpop.permute.xlu2 %103 }
  0xe5   :  { %v1723_v30 = vpop.permute.xlu2 %113 }
  0xf4   :  { %v1725_v36 = vpop.permute.xlu1 %105 }
  0xf5   :  { %v121_v53 = vsel %vm119_vm1, %v1725_v36, %v1723_v30  ;;  %v112_v58 = vpop.permute.xlu0 %111 }
  0xf6   :  { %v130_v22 = vmax.f32 %v1234_v38, %v121_v53  ;;  %v120_v18 = vsel %vm119_vm1, %v1640_v27, %v112_v58  ;;  %v1981_v38 = vand.u32 4294901760, %v1735_v10  ;;  %v1757_v53 = vsub.f32 %v28_v56, %v1732_v14 }
  0xf7   :  { %v128_v1 = vmax.f32 %v1240_v42, %v120_v18 }
  0xf8   :  { %v1761_v25 = vand.u32 4294901760, %v130_v22  ;;  %v722_v44 = vsub.f32 %v1735_v10, %v1981_v38  ;;  %v1980_v21 = vand.u32 4294901760, %v1757_v53 }
  0xf9   :  { %v1763_v42 = vand.u32 4294901760, %v128_v1 }
  0xfa   :  { %v723_v40 = vand.u32 4294901760, %v722_v44  ;;  %v728_v12 = vsub.f32 %v1757_v53, %v1980_v21  ;;  %v177_v41 = vsub.f32 %v130_v22, %v1761_v25  ;;  %v1984_v44 = vand.u32 4294901760, %v1511_v35 }
  0xfb   :  { %298 = vmatmul.f32.vlgmr.msra.gmra.mxu1 %v1763_v42  ;;  %v169_v11 = vsub.f32 %v128_v1, %v1763_v42 }
  0xfc   :  { %v1772_v33 = vpop.permute.xlu1 %115  ;;  %818 = vmatpush.msra.mxu1 %v1500_v20  ;;  %724 = vmatpush.msrb.mxu3 %v723_v40  ;;  %v729_v1 = vand.u32 4294901760, %v728_v12  ;;  %v178_v38 = vand.u32 4294901760, %v177_v41  ;;  %v1985_v40 = vand.u32 4294901760, %v1523_v50 }
  0xfd   :  { %v1778_v52 = vpop.permute.xlu0 %107  ;;  %364 = vmatmul.f32.vlgmr.msra.gmra.mxu2 %v169_v11  ;;  %v170_v56 = vand.u32 4294901760, %v169_v11 }
  0xfe   :  { %v122_v18 = vsel %vm119_vm1, %v1778_v52, %v1772_v33  ;;  %820 = vmatpush.msra.mxu1 %v1508_v61  ;;  %730 = vmatpush.msrb.mxu3 %v729_v1  ;;  %v1992_v1 = vand.u32 4294901760, %v1685_v6 }
  0xff   :  { %v132_v19 = vmax.f32 %v1255_v48, %v122_v18  ;;  %418 = vmatmul.f32.vlgmr.msra.gmra.mxu3 %v170_v56  ;;  %v171_v16 = vsub.f32 %v169_v11, %v170_v56  ;;  %877 = vmatpush.msra.mxu2 %v1984_v44  ;;  %v124_v48 = vsel %vm119_vm1, %v112_v58, %v1640_v27  ;;  %v1802_v11 = vpop.permute.xlu2 %109 }
 0x100   :  { %822 = vmatpush.msra.mxu1 %v1520_v34  ;;  %956 = vmatpush.msra.mxu3 %v1500_v20  ;;  %v179_v20 = vsub.f32 %v177_v41, %v178_v38 }
 0x101   :  { %v1789_v21 = vand.u32 4294901760, %v132_v19  ;;  %v172_v22 = vand.u32 4294901760, %v171_v16  ;;  %881 = vmatpush.msra.mxu2 %v1985_v40 }
 0x102   :  { %824 = vmatpush.msra.mxu1 %v1536_v46  ;;  %958 = vmatpush.msra.mxu3 %v1508_v61 }
 0x103   :  { %173 = vmatmul.f32.vlgmr.msra.gmra.mxu0 %v172_v22  ;;  %302 = vmatmul.f32.gmra.mxu1 %v1761_v25  ;;  %v185_v56 = vsub.f32 %v132_v19, %v1789_v21  ;;  %v1993_v19 = vand.u32 4294901760, %v1697_v7 }
 0x104   :  { %885 = vmatpush.msra.mxu2 %v649_v13  ;;  %750 = vmatpush.msra.mxu0 %v1511_v35  ;;  %v129_v13 = vmax.f32 %v1242_v43, %v124_v48  ;;  %v1986_v35 = vand.u32 4294901760, %v1583_v3 }
 0x105   :  { %v1804_v12 = vpop.permute.xlu0 %117  ;;  %369 = vmatmul.f32.gmra.mxu2 %v177_v41  ;;  %826 = vmatpush.msra.mxu1 %v1552_v29  ;;  %v180_v41 = vand.u32 4294901760, %v179_v20  ;;  %v186_v18 = vand.u32 4294901760, %v185_v56 }
 0x106   :  { %v123_v27 = vsel %vm119_vm1, %v1802_v11, %v1804_v12  ;;  %889 = vmatpush.msra.mxu2 %v655_v45  ;;  %960 = vmatpush.msra.mxu3 %v1520_v34  ;;  %v1827_v43 = vand.u32 4294901760, %v129_v13 }
 0x107   :  { %v134_v58 = vmax.f32 %v1266_v54, %v123_v27  ;;  %424 = vmatmul.f32.gmra.mxu3 %v178_v38  ;;  %753 = vmatpush.msra.mxu0 %v1523_v50  ;;  %v125_v54 = vsel %vm119_vm1, %v1723_v30, %v1725_v36  ;;  %v187_v34 = vsub.f32 %v185_v56, %v186_v18 }
 0x108   :  { %828 = vmatpush.msra.mxu1 %v1566_v62  ;;  %893 = vmatpush.msra.mxu2 %v661_v15  ;;  %v131_v45 = vmax.f32 %v1257_v49, %v125_v54 }
 0x109   :  { %v1820_v61 = vand.u32 4294901760, %v134_v58  ;;  %962 = vmatpush.msra.mxu3 %v1536_v46  ;;  %756 = vmatpush.msra.mxu0 %v1539_v63  ;;  %v1843_v46 = vsub.f32 %v129_v13, %v1827_v43  ;;  %v1987_v63 = vand.u32 4294901760, %v1602_v57  ;;  %v188_v15 = vand.u32 4294901760, %v187_v34 }
 0x10a   :  { %830 = vmatpush.msra.mxu1 %v1580_v26  ;;  %897 = vmatpush.msra.mxu2 %v1986_v35  ;;  %v1854_v49 = vand.u32 4294901760, %v131_v45 }
 0x10b   :  { %181 = vmatmul.f32.gmra.mxu0 %v180_v41  ;;  %306 = vmatmul.f32.gmra.mxu1 %v1789_v21  ;;  %v193_v50 = vsub.f32 %v134_v58, %v1820_v61 }
 0x10c   :  { %964 = vmatpush.msra.mxu3 %v1552_v29  ;;  %759 = vmatpush.msra.mxu0 %v1555_v32  ;;  %v1988_v32 = vand.u32 4294901760, %v1619_v24  ;;  %v604_v29 = vand.u32 4294901760, %v1843_v46 }
 0x10d   :  { %374 = vmatmul.f32.gmra.mxu2 %v185_v56  ;;  %832 = vmatpush.msra.mxu1 %v1599_v4  ;;  %v194_v30 = vand.u32 4294901760, %v193_v50 }
 0x10e   :  { %901 = vmatpush.msra.mxu2 %v1987_v63  ;;  %966 = vmatpush.msra.mxu3 %v1566_v62  ;;  %v126_v62 = vsel %vm119_vm1, %v1772_v33, %v1778_v52  ;;  %v605_v38 = vsub.f32 %v1843_v46, %v604_v29  ;;  %v1990_v33 = vand.u32 4294901760, %v1647_v37 }
 0x10f   :  { %430 = vmatmul.f32.gmra.mxu3 %v186_v18  ;;  %762 = vmatpush.msra.mxu0 %v1569_v59  ;;  %v1989_v59 = vand.u32 4294901760, %v1631_v9  ;;  %v133_v36 = vmax.f32 %v1253_v47, %v126_v62 }
 0x110   :  { %834 = vmatpush.msra.mxu1 %v1615_v60  ;;  %905 = vmatpush.msra.mxu2 %v1988_v32  ;;  %v606_v52 = vand.u32 4294901760, %v605_v38 }
 0x111   :  { %968 = vmatpush.msra.mxu3 %v1580_v26  ;;  %765 = vmatpush.msra.mxu0 %v1583_v3  ;;  %v195_v26 = vsub.f32 %v193_v50, %v194_v30  ;;  %v1869_v3 = vsub.f32 %v131_v45, %v1854_v49  ;;  %v1884_v47 = vand.u32 4294901760, %v133_v36 }
 0x112   :  { %836 = vmatpush.msra.mxu1 %v1628_v0  ;;  %909 = vmatpush.msra.mxu2 %v1989_v59 }
 0x113   :  { %189 = vmatmul.f32.gmra.mxu0 %v188_v15  ;;  %310 = vmatmul.f32.gmra.mxu1 %v1820_v61 }
 0x114   :  { %970 = vmatpush.msra.mxu3 %v1599_v4  ;;  %768 = vmatpush.msra.mxu0 %v1602_v57  ;;  %v196_v4 = vand.u32 4294901760, %v195_v26  ;;  %v1991_v57 = vand.u32 4294901760, %v1666_v28 }
 0x115   :  { %379 = vmatmul.f32.gmra.mxu2 %v193_v50  ;;  %838 = vmatpush.msra.mxu1 %v1644_v23 }
 0x116   :  { %913 = vmatpush.msra.mxu2 %v1990_v33  ;;  %972 = vmatpush.msra.mxu3 %v1615_v60  ;;  %v612_v60 = vand.u32 4294901760, %v1869_v3 }
 0x117   :  { %436 = vmatmul.f32.gmra.mxu3 %v194_v30  ;;  %771 = vmatpush.msra.mxu0 %v1619_v24  ;;  %v127_v24 = vsel %vm119_vm1, %v1804_v12, %v1802_v11 }
 0x118   :  { %840 = vmatpush.msra.mxu1 %v1663_v2  ;;  %917 = vmatpush.msra.mxu2 %v1991_v57  ;;  %v613_v31 = vsub.f32 %v1869_v3, %v612_v60 }
 0x119   :  { %974 = vmatpush.msra.mxu3 %v1628_v0  ;;  %774 = vmatpush.msra.mxu0 %v1631_v9  ;;  %v619_v0 = vsub.f32 %v133_v36, %v1884_v47  ;;  %v135_v9 = vmax.f32 %v1268_v55, %v127_v24 }
 0x11a   :  { %842 = vmatpush.msra.mxu1 %v1679_v17  ;;  %921 = vmatpush.msra.mxu2 %v1992_v1 }
 0x11b   :  { %197 = vmatmul.f32.gmra.mxu0 %v196_v4  ;;  %554 = vmatmul.f32.vlgmr.msrb.gmra.mxu1 %v1763_v42  ;;  %v626_v55 = vand.u32 4294901760, %v135_v9 }
 0x11c   :  { %976 = vmatpush.msra.mxu3 %v1644_v23  ;;  %777 = vmatpush.msra.mxu0 %v1647_v37  ;;  %v614_v23 = vand.u32 4294901760, %v613_v31  ;;  %v620_v37 = vand.u32 4294901760, %v619_v0 }
 0x11d   :  { %607 = vmatmul.f32.vlgmr.msrb.gmra.mxu2 %v606_v52  ;;  %844 = vmatpush.msra.mxu1 %v1694_v51 }
 0x11e   :  { %925 = vmatpush.msra.mxu2 %v1993_v19  ;;  %978 = vmatpush.msra.mxu3 %v1663_v2  ;;  %v1994_v2 = vand.u32 4294901760, %v1735_v10 }
 0x11f   :  { %732 = vmatmul.f32.vlgmr.msrb.gmra.mxu3 %v1827_v43  ;;  %780 = vmatpush.msra.mxu0 %v1666_v28  ;;  %v627_v28 = vsub.f32 %v135_v9, %v626_v55 }
 0x120   :  { %846 = vmatpush.msra.mxu1 %v1709_v5  ;;  %929 = vmatpush.msra.mxu2 %v715_v39 }
 0x121   :  { %980 = vmatpush.msra.mxu3 %v1679_v17  ;;  %783 = vmatpush.msra.mxu0 %v1685_v6  ;;  %v1995_v17 = vand.u32 4294901760, %v1757_v53  ;;  %v621_v6 = vsub.f32 %v619_v0, %v620_v37 }
 0x122   :  { %848 = vmatpush.msra.mxu1 %v1732_v14  ;;  %933 = vmatpush.msra.mxu2 %v1994_v2 }
 0x123   :  { %505 = vmatmul.f32.vlgmr.msrb.gmra.mxu0 %v1763_v42  ;;  %558 = vmatmul.f32.gmra.mxu1 %v1761_v25 }
 0x124   :  { %982 = vmatpush.msra.mxu3 %v1694_v51  ;;  %786 = vmatpush.msra.mxu0 %v1697_v7  ;;  %v622_v51 = vand.u32 4294901760, %v621_v6  ;;  %v628_v7 = vand.u32 4294901760, %v627_v28 }
 0x125   :  { %615 = vmatmul.f32.gmra.mxu2 %v614_v23 }
 0x126   :  { %937 = vmatpush.msra.mxu2 %v1995_v17  ;;  %984 = vmatpush.msra.mxu3 %v1709_v5  ;;  %v629_v39 = vsub.f32 %v627_v28, %v628_v7 }
 0x127   :  { %736 = vmatmul.f32.gmra.mxu3 %v1854_v49  ;;  %789 = vmatpush.msra.mxu0 %v1712_v8 }
 0x128   :  { %986 = vmatpush.msra.mxu3 %v1732_v14  ;;  %v630_v5 = vand.u32 4294901760, %v629_v39 }
 0x129   :  { %792 = vmatpush.msra.mxu0 %v1735_v10 }
 0x12b   :  { %509 = vmatmul.f32.gmra.mxu0 %v1761_v25  ;;  %562 = vmatmul.f32.gmra.mxu1 %v1789_v21 }
 0x12c   :  { %795 = vmatpush.msra.mxu0 %v1757_v53 }
 0x12d   :  { %623 = vmatmul.f32.gmra.mxu2 %v622_v51 }
 0x12f   :  { %740 = vmatmul.f32.gmra.mxu3 %v1884_v47 }
 0x133   :  { %513 = vmatmul.f32.gmra.mxu0 %v1789_v21  ;;  %566 = vmatmul.f32.gmra.mxu1 %v1820_v61 }
 0x135   :  { %631 = vmatmul.f32.gmra.mxu2 %v630_v5 }
 0x137   :  { %744 = vmatmul.f32.gmra.mxu3 %v626_v55 }
 0x13b   :  { %517 = vmatmul.f32.gmra.mxu0 %v1820_v61  ;;  %852 = vmatmul.f32.vlgmr.msra.gmra.mxu1 %v604_v29 }
 0x13d   :  { %939 = vmatmul.f32.vlgmr.msra.gmra.mxu2 %v1827_v43 }
 0x13f   :  { %988 = vmatmul.f32.vlgmr.msra.gmra.mxu3 %v1827_v43 }
 0x143   :  { %798 = vmatmul.f32.vlgmr.msra.gmra.mxu0 %v1843_v46  ;;  %858 = vmatmul.f32.gmra.mxu1 %v612_v60 }
 0x145   :  { %943 = vmatmul.f32.gmra.mxu2 %v1854_v49 }
 0x147   :  { %992 = vmatmul.f32.gmra.mxu3 %v1854_v49 }
 0x14b   :  { %803 = vmatmul.f32.gmra.mxu0 %v1869_v3  ;;  %864 = vmatmul.f32.gmra.mxu1 %v620_v37 }
 0x14d   :  { %947 = vmatmul.f32.gmra.mxu2 %v1884_v47 }
 0x14f   :  { %996 = vmatmul.f32.gmra.mxu3 %v1884_v47 }
 0x153   :  { %808 = vmatmul.f32.gmra.mxu0 %v619_v0  ;;  %870 = vmatmul.f32.gmra.mxu1 %v628_v7 }
 0x155   :  { %951 = vmatmul.f32.gmra.mxu2 %v626_v55 }
 0x157   :  { %1000 = vmatmul.f32.gmra.mxu3 %v626_v55 }
 0x15b   :  { %813 = vmatmul.f32.gmra.mxu0 %v627_v28 }
 0x178   :  { %v299_v8 = vpop.f32.mrf.mxu1 }
 0x180   :  { %v174_v14 = vpop.f32.mrf.mxu0  ;;  %v303_v10 = vpop.f32.mrf.mxu1 }
 0x181   :  { %v365_v53 = vpop.f32.mrf.mxu2  ;;  %v300_v54 = vadd.f32 %v299_v8, %v174_v14 }
 0x182   :  { %v419_v25 = vpop.f32.mrf.mxu3 }
 0x183   :  { %v366_v50 = vadd.f32 %v365_v53, %v300_v54 }
 0x185   :  { %v420_v46 = vadd.f32 %v419_v25, %v366_v50 }
 0x188   :  { %v182_v42 = vpop.f32.mrf.mxu0  ;;  %v307_v21 = vpop.f32.mrf.mxu1 }
 0x189   :  { %v370_v16 = vpop.f32.mrf.mxu2  ;;  %v304_v63 = vadd.f32 %v303_v10, %v182_v42 }
 0x18a   :  { %v425_v44 = vpop.f32.mrf.mxu3 }
 0x18b   :  { %v371_v29 = vadd.f32 %v370_v16, %v304_v63 }
 0x18d   :  { %v426_v26 = vadd.f32 %v425_v44, %v371_v29 }
 0x190   :  { %v190_v22 = vpop.f32.mrf.mxu0  ;;  %v311_v40 = vpop.f32.mrf.mxu1 }
 0x191   :  { %v375_v48 = vpop.f32.mrf.mxu2  ;;  %v308_v3 = vadd.f32 %v307_v21, %v190_v22 }
 0x192   :  { %v431_v11 = vpop.f32.mrf.mxu3 }
 0x193   :  { %v376_v47 = vadd.f32 %v375_v48, %v308_v3 }
 0x195   :  { %v432_v1 = vadd.f32 %v431_v11, %v376_v47 }
 0x198   :  { %v198_v12 = vpop.f32.mrf.mxu0  ;;  %v555_v20 = vpop.f32.mrf.mxu1 }
 0x199   :  { %v380_v56 = vpop.f32.mrf.mxu2  ;;  %v312_v0 = vadd.f32 %v311_v40, %v198_v12 }
 0x19a   :  { %v437_v27 = vpop.f32.mrf.mxu3 }
 0x19b   :  { %v381_v2 = vadd.f32 %v380_v56, %v312_v0 }
 0x19d   :  { %v438_v5 = vadd.f32 %v437_v27, %v381_v2 }
 0x1a0   :  { %v506_v13 = vpop.f32.mrf.mxu0  ;;  %v559_v58 = vpop.f32.mrf.mxu1 }
 0x1a1   :  { %v608_v61 = vpop.f32.mrf.mxu2  ;;  %v507_v49 = vadd.f32 %v506_v13, %v420_v46 }
 0x1a2   :  { %v733_v41 = vpop.f32.mrf.mxu3 }
 0x1a3   :  { %v556_v62 = vadd.f32 %v555_v20, %v507_v49 }
 0x1a5   :  { %v609_v33 = vadd.f32 %v608_v61, %v556_v62 }
 0x1a7   :  { %v734_v52 = vadd.f32 %v733_v41, %v609_v33 }
 0x1a8   :  { %v510_v18 = vpop.f32.mrf.mxu0  ;;  %v563_v43 = vpop.f32.mrf.mxu1 }
 0x1a9   :  { %v616_v35 = vpop.f32.mrf.mxu2  ;;  %v511_v4 = vadd.f32 %v510_v18, %v426_v26 }
 0x1aa   :  { %v737_v34 = vpop.f32.mrf.mxu3 }
 0x1ab   :  { %v560_v60 = vadd.f32 %v559_v58, %v511_v4 }
 0x1ad   :  { %v617_v55 = vadd.f32 %v616_v35, %v560_v60 }
 0x1af   :  { %v738_v6 = vadd.f32 %v737_v34, %v617_v55 }
 0x1b0   :  { %v514_v45 = vpop.f32.mrf.mxu0  ;;  %v567_v30 = vpop.f32.mrf.mxu1 }
 0x1b1   :  { %v624_v15 = vpop.f32.mrf.mxu2  ;;  %v515_v23 = vadd.f32 %v514_v45, %v432_v1 }
 0x1b2   :  { %v741_v32 = vpop.f32.mrf.mxu3 }
 0x1b3   :  { %v564_v51 = vadd.f32 %v563_v43, %v515_v23 }
 0x1b5   :  { %v625_v25 = vadd.f32 %v624_v15, %v564_v51 }
 0x1b7   :  { %v742_v44 = vadd.f32 %v741_v32, %v625_v25 }
 0x1b8   :  { %v518_v59 = vpop.f32.mrf.mxu0  ;;  %v853_v57 = vpop.f32.mrf.mxu1 }
 0x1b9   :  { %v632_v36 = vpop.f32.mrf.mxu2  ;;  %v519_v42 = vadd.f32 %v518_v59, %v438_v5 }
 0x1ba   :  { %v745_v38 = vpop.f32.mrf.mxu3 }
 0x1bb   :  { %v568_v22 = vadd.f32 %v567_v30, %v519_v42 }
 0x1bd   :  { %v633_v58 = vadd.f32 %v632_v36, %v568_v22 }
 0x1bf   :  { %v746_v43 = vadd.f32 %v745_v38, %v633_v58 }
 0x1c0   :  { %v799_v24 = vpop.f32.mrf.mxu0  ;;  %v859_v28 = vpop.f32.mrf.mxu1 }
 0x1c1   :  { %v800_v9 = vadd.f32 %v799_v24, %v734_v52  ;;  %v940_v31 = vpop.f32.mrf.mxu2 }
 0x1c2   :  { %v989_v19 = vpop.f32.mrf.mxu3 }
 0x1c3   :  { %v854_v37 = vadd.f32 %v853_v57, %v800_v9 }
 0x1c5   :  { %v941_v17 = vadd.f32 %v940_v31, %v854_v37 }
 0x1c7   :  { %v1942_v7 = vadd.f32 %v989_v19, %v941_v17 }
 0x1c8   :  { %v804_v39 = vpop.f32.mrf.mxu0  ;;  %v865_v48 = vpop.f32.mrf.mxu1 }
 0x1c9   :  { %v1004_v8 = vmul.f32 1.442695, %v1942_v7  ;;  %v805_v14 = vadd.f32 %v804_v39, %v738_v6  ;;  %v944_v10 = vpop.f32.mrf.mxu2 }
 0x1ca   :  { %v993_v53 = vpop.f32.mrf.mxu3 }
 0x1cb   :  { %1104 = vpow2.f32 %v1004_v8  ;;  %v860_v21 = vadd.f32 %v859_v28, %v805_v14 }
 0x1cd   :  { %v945_v16 = vadd.f32 %v944_v10, %v860_v21 }
 0x1cf   :  { %v1945_v40 = vadd.f32 %v993_v53, %v945_v16 }
 0x1d0   :  { %v809_v11 = vpop.f32.mrf.mxu0  ;;  %v871_v15 = vpop.f32.mrf.mxu1 }
 0x1d1   :  { %v1105_v12 = vpop.eup %1104  ;;  %v1006_v20 = vmul.f32 1.442695, %v1945_v40  ;;  %v810_v56 = vadd.f32 %v809_v11, %v742_v44  ;;  %v948_v13 = vpop.f32.mrf.mxu2 }
 0x1d2   :  { %v1012_v27 = vadd.f32 1e-08, %v1105_v12  ;;  %v997_v41 = vpop.f32.mrf.mxu3 }
 0x1d3   :  { %1106 = vpow2.f32 %v1006_v20  ;;  %v866_v61 = vadd.f32 %v865_v48, %v810_v56 }
 0x1d4   :  { %1108 = vrcp.f32 %v1012_v27  ;;  %v1027_v59 = vand.u32 2147483648, %v1012_v27  ;;  %v1025_v36 = vand.u32 2147483647, %v1012_v27  ;;  %vm1021_vm3 = vweird.f32 %v1012_v27 }
 0x1d5   :  { %v949_v18 = vadd.f32 %v948_v13, %v866_v61 }
 0x1d6   :  { %v1028_v52 = vor.u32 1.1754944e-38, %v1027_v59  ;;  %vm1026_vm5 = vcmp.eq.f32.partialorder %v1025_v36, 8.507059e+37 }
 0x1d7   :  { %v1948_v54 = vadd.f32 %v997_v41, %v949_v18 }
 0x1d8   :  { %v814_v35 = vpop.f32.mrf.mxu0 }
 0x1d9   :  { %v1107_v34 = vpop.eup %1106  ;;  %v1008_v50 = vmul.f32 1.442695, %v1948_v54  ;;  %v815_v45 = vadd.f32 %v814_v35, %v746_v43  ;;  %v952_v49 = vpop.f32.mrf.mxu2 }
 0x1da   :  { %v1109_v46 = vpop.eup %1108  ;;  %v1013_v63 = vadd.f32 1e-08, %v1107_v34  ;;  %v1001_v26 = vpop.f32.mrf.mxu3 }
 0x1db   :  { %v1017_v30 = vmul.f32 %v1109_v46, %v1012_v27  ;;  %1110 = vpow2.f32 %v1008_v50  ;;  %v872_v32 = vadd.f32 %v871_v15, %v815_v45  ;;  %vm1022_vm2 = vweird.f32 %v1109_v46 }
 0x1dc   :  { %1112 = vrcp.f32 %v1013_v63  ;;  %vm1023_vm4 = vmor %vm1021_vm3, %vm1022_vm2  ;;  %v1042_v19 = vand.u32 2147483648, %v1013_v63  ;;  %v1040_v23 = vand.u32 2147483647, %v1013_v63  ;;  %vm1036_vm8 = vweird.f32 %v1013_v63 }
 0x1dd   :  { %v1018_v29 = vsub.f32 1.0, %v1017_v30  ;;  %v953_v62 = vadd.f32 %v952_v49, %v872_v32 }
 0x1de   :  { %v1043_v28 = vor.u32 1.1754944e-38, %v1042_v19  ;;  %vm1041_vm10 = vcmp.eq.f32.partialorder %v1040_v23, 8.507059e+37 }
 0x1df   :  { %v1019_v3 = vmul.f32 %v1109_v46, %v1018_v29  ;;  %v1951_v38 = vadd.f32 %v1001_v26, %v953_v62 }
 0x1e1   :  { %v1111_v33 = vpop.eup %1110  ;;  %v1020_v4 = vadd.f32 %v1109_v46, %v1019_v3  ;;  %v1010_v57 = vmul.f32 1.442695, %v1951_v38 }
 0x1e2   :  { %v1113_v47 = vpop.eup %1112  ;;  %v1014_v60 = vadd.f32 1e-08, %v1111_v33 }
 0x1e3   :  { %v1024_v24 = vsel %vm1023_vm4, %v1109_v46, %v1020_v4  ;;  %v1032_v1 = vmul.f32 %v1113_v47, %v1013_v63  ;;  %1114 = vpow2.f32 %v1010_v57  ;;  %vm1037_vm7 = vweird.f32 %v1113_v47 }
 0x1e4   :  { %v1029_v0 = vsel %vm1026_vm5, %v1028_v52, %v1024_v24  ;;  %1116 = vrcp.f32 %v1014_v60  ;;  %vm1038_vm9 = vmor %vm1036_vm8, %vm1037_vm7  ;;  %v1057_v14 = vand.u32 2147483648, %v1014_v60  ;;  %v1055_v53 = vand.u32 2147483647, %v1014_v60 }
 0x1e5   :  { %v1030_v9 = vmul.f32 %v1029_v0, %v1942_v7  ;;  %v1033_v31 = vsub.f32 1.0, %v1032_v1  ;;  %vm1051_vm12 = vweird.f32 %v1014_v60 }
 0x1e6   :  { %v1058_v21 = vor.u32 1.1754944e-38, %v1057_v14  ;;  %vm1056_vm14 = vcmp.eq.f32.partialorder %v1055_v53, 8.507059e+37 }
 0x1e7   :  { %1077 = vst.msk [vmem:[#allocation2] sm:$0xff] %vm1076_vm6, %v1030_v9  ;;  %v1034_v55 = vmul.f32 %v1113_v47, %v1033_v31 }
 0x1e9   :  { %v1115_v37 = vpop.eup %1114  ;;  %v1035_v2 = vadd.f32 %v1113_v47, %v1034_v55 }
 0x1ea   :  { %v1117_v17 = vpop.eup %1116  ;;  %v1015_v6 = vadd.f32 1e-08, %v1115_v37 }
 0x1eb   :  { %v1039_v51 = vsel %vm1038_vm9, %v1113_v47, %v1035_v2  ;;  %v1047_v39 = vmul.f32 %v1117_v17, %v1014_v60  ;;  %vm1052_vm11 = vweird.f32 %v1117_v17 }
 0x1ec   :  { %v1044_v5 = vsel %vm1041_vm10, %v1043_v28, %v1039_v51  ;;  %1118 = vrcp.f32 %v1015_v6  ;;  %vm1053_vm13 = vmor %vm1051_vm12, %vm1052_vm11  ;;  %v1070_v20 = vand.u32 2147483647, %v1015_v6  ;;  %vm1066_vm0 = vweird.f32 %v1015_v6 }
 0x1ed   :  { %v1045_v7 = vmul.f32 %v1044_v5, %v1945_v40  ;;  %v1048_v8 = vsub.f32 1.0, %v1047_v39  ;;  %v1072_v40 = vand.u32 2147483648, %v1015_v6 }
 0x1ee   :  { %vm1071_vm2 = vcmp.eq.f32.partialorder %v1070_v20, 8.507059e+37 }
 0x1ef   :  { %1078 = vst.msk [vmem:[#allocation2 + $0x8] sm:$0xff] %vm1076_vm6, %v1045_v7  ;;  %v1049_v10 = vmul.f32 %v1117_v17, %v1048_v8  ;;  %v1073_v27 = vor.u32 1.1754944e-38, %v1072_v40 }
 0x1f1   :  { %v1050_v25 = vadd.f32 %v1117_v17, %v1049_v10 }
 0x1f2   :  { %v1119_v42 = vpop.eup %1118 }
 0x1f3   :  { %v1054_v16 = vsel %vm1053_vm13, %v1117_v17, %v1050_v25  ;;  %v1062_v44 = vmul.f32 %v1119_v42, %v1015_v6  ;;  %vm1067_vm15 = vweird.f32 %v1119_v42 }
 0x1f4   :  { %v1059_v22 = vsel %vm1056_vm14, %v1058_v21, %v1054_v16  ;;  %vm1068_vm1 = vmor %vm1066_vm0, %vm1067_vm15 }
 0x1f5   :  { %v1060_v48 = vmul.f32 %v1059_v22, %v1948_v54  ;;  %v1063_v11 = vsub.f32 1.0, %v1062_v44 }
 0x1f7   :  { %1079 = vst.msk [vmem:[#allocation2 + $0x10] sm:$0xff] %vm1076_vm6, %v1060_v48  ;;  %v1064_v12 = vmul.f32 %v1119_v42, %v1063_v11 }
 0x1f9   :  { %v1065_v56 = vadd.f32 %v1119_v42, %v1064_v12 }
 0x1fb   :  { %v1069_v13 = vsel %vm1068_vm1, %v1119_v42, %v1065_v56 }
 0x1fc   :  { %v1074_v58 = vsel %vm1071_vm2, %v1073_v27, %v1069_v13 }
 0x1fd   :  { %v1075_v61 = vmul.f32 %v1074_v58, %v1951_v38 }
 0x1ff   :  { %1080 = vst.msk [vmem:[#allocation2 + $0x18] sm:$0xff] %vm1076_vm6, %v1075_v61 }
 0x200   :  { %1093 = dma.vmem_to_hbm [thread:$0]  %s1086_s20, 512, %s1088_s23, [#allocation3], %s1149_s24, %s1149_s24, %s1150_s25  }
 0x201   :  { %1144 = dma.done.wait [#allocation3], 512  }
 0x202   :  { %1145 = vsyncadd [#allocation3], 4294966784 }
 0x203   :  { %1098 = vsyncpa [#allocation3], 1 }

</bundles_post_ra>
